<compile_context>
chip_gen: v6e
topology: v6e:2x2x1
jax: 0.10.0
libtpu: 0.0.40
codegen_flags: <defaults>
</compile_context>

<pallas_src>
import functools

import jax
import jax.numpy as jnp
from jax.experimental import pallas as pl
from jax.experimental.pallas import tpu as pltpu


# ---------------------------------------------------------------------------
# Kernel 1: squeeze — per-(n, c) mean over time, tiled along T.
# ---------------------------------------------------------------------------
def _squeeze_kernel(x_ref, m_ref, *, inv_t, t_tile, t_total, mask_tail):
    t = pl.program_id(1)

    @pl.when(t == 0)
    def _init():
        m_ref[...] = jnp.zeros_like(m_ref)

    xt = x_ref[...].astype(jnp.float32)                       # (C, t_tile)
    if mask_tail:
        # Last tile may overhang T; zero out-of-range lanes before summing.
        col = t * t_tile + jax.lax.broadcasted_iota(jnp.int32, xt.shape, 1)
        xt = jnp.where(col < t_total, xt, 0.0)
    m_ref[...] = m_ref[...] + jnp.sum(xt, axis=-1, keepdims=True)   # (C, 1)

    @pl.when(t == pl.num_programs(1) - 1)
    def _finalize():
        m_ref[...] = m_ref[...] * inv_t


# ---------------------------------------------------------------------------
# Kernel 2: gate — batched excitation for the whole batch in one small call.
# ---------------------------------------------------------------------------
def _gate_kernel(m_ref, w1t_ref, b1_ref, w2t_ref, b2_ref, g_ref):
    h = jnp.dot(m_ref[...], w1t_ref[...],
                preferred_element_type=jnp.float32) + b1_ref[...]
    h = jnp.maximum(h, 0.0)                                    # (N, Cs)
    z = jnp.dot(h, w2t_ref[...],
                preferred_element_type=jnp.float32) + b2_ref[...]
    # Exact sigmoid: this is off the hot path (runs once per call on (N, C)),
    # so the EUP-approx reciprocal is not worth the accuracy risk at 1e-4.
    g_ref[...] = (1.0 / (1.0 + jnp.exp(-z))).astype(g_ref.dtype)


# ---------------------------------------------------------------------------
# Kernel 3: scale — out = x * g, elementwise, gate broadcast along lanes.
# ---------------------------------------------------------------------------
def _scale_kernel(x_ref, g_ref, o_ref):
    o_ref[...] = (x_ref[...].astype(jnp.float32) * g_ref[...]).astype(o_ref.dtype)


# ---------------------------------------------------------------------------
# Tiling / VMEM helpers (generation-aware).
# ---------------------------------------------------------------------------
def _vmem_capacity_bytes():
    try:
        return int(pltpu.get_tpu_info().vmem_capacity_bytes)
    except Exception:
        return 64 * 1024 * 1024  # conservative fallback: v7x per-TC VMEM


def _pick_t_tile(C, T, itemsize, budget_bytes, max_tile=2048):
    """Largest lane-dense (multiple-of-128) T tile whose double-buffered
    in+out working set fits the VMEM budget, capped at `max_tile` lanes."""
    per_lane = 4 * C * itemsize  # x-in + out blocks, each double-buffered
    by_budget = max(128, (budget_bytes // max(per_lane, 1)) // 128 * 128)
    target = int(min(max_tile, by_budget))
    return T if T <= target else target


def _vmem_limit(needed_bytes, cap_bytes):
    return int(min(int(0.85 * cap_bytes),
                   max(needed_bytes + (4 << 20), 8 << 20)))


# ---------------------------------------------------------------------------
# Wrapper.
# ---------------------------------------------------------------------------
def se_connect(x, w1, b1, w2, b2):
    """SE_Connect forward.

    x : (N, C, T)
    w1: (C//s, C)  linear1 weight     b1: (C//s,) linear1 bias
    w2: (C, C//s)  linear2 weight     b2: (C,)    linear2 bias
    """
    N, C, T = x.shape
    Cs = w1.shape[0]
    assert w1.shape == (Cs, C) and w2.shape == (C, Cs)
    assert b1.shape == (Cs,) and b2.shape == (C,)

    itemsize = x.dtype.itemsize
    cap = _vmem_capacity_bytes()
    budget = int(0.70 * cap)

    t_tile = _pick_t_tile(C, T, itemsize, budget)
    num_t = pl.cdiv(T, t_tile)
    mask_tail = (T % t_tile) != 0

    # ---- 1) Squeeze: per-channel mean over time (T-tiled reduction). -------
    sq_needed = 2 * C * t_tile * itemsize + 2 * C * 4
    m3 = pl.pallas_call(
        functools.partial(_squeeze_kernel, inv_t=1.0 / T, t_tile=t_tile,
                          t_total=T, mask_tail=mask_tail),
        out_shape=jax.ShapeDtypeStruct((N, C, 1), jnp.float32),
        grid=(N, num_t),
        in_specs=[pl.BlockSpec((None, C, t_tile), lambda n, t: (n, 0, t))],
        out_specs=pl.BlockSpec((None, C, 1), lambda n, t: (n, 0, 0)),
        compiler_params=pltpu.CompilerParams(
            dimension_semantics=("parallel", "arbitrary"),
            vmem_limit_bytes=_vmem_limit(sq_needed, cap)),
    )(x)

    # ---- 2) Gate: batched excitation (one well-shaped matmul pair). --------
    g = pl.pallas_call(
        _gate_kernel,
        out_shape=jax.ShapeDtypeStruct((N, C), jnp.float32),
    )(m3.reshape(N, C), jnp.transpose(w1), b1.reshape(1, Cs),
      jnp.transpose(w2), b2.reshape(1, C))

    # ---- 3) Scale: out = x * g, lane-dense tiles, both axes parallel. ------
    sc_needed = 4 * C * t_tile * itemsize + 4 * C * 4
    out = pl.pallas_call(
        _scale_kernel,
        out_shape=jax.ShapeDtypeStruct((N, C, T), x.dtype),
        grid=(N, num_t),
        in_specs=[
            pl.BlockSpec((None, C, t_tile), lambda n, t: (n, 0, t)),
            pl.BlockSpec((None, C, 1), lambda n, t: (n, 0, 0)),
        ],
        out_specs=pl.BlockSpec((None, C, t_tile), lambda n, t: (n, 0, t)),
        compiler_params=pltpu.CompilerParams(
            dimension_semantics=("parallel", "parallel"),
            vmem_limit_bytes=_vmem_limit(sc_needed, cap)),
    )(x, g.reshape(N, C, 1))

    return out


def _reference(x, w1, b1, w2, b2):
    """Pure-JAX reference mirroring the PyTorch SE_Connect forward."""
    hi = jax.lax.Precision.HIGHEST
    m = jnp.mean(x, axis=2)
    h = jax.nn.relu(jnp.dot(m, w1.T, precision=hi) + b1)
    g = jax.nn.sigmoid(jnp.dot(h, w2.T, precision=hi) + b2)
    return x * g[:, :, None]


if __name__ == "__main__":
    # Small shapes consistent with the module: batch=2, channels=16, T=16, s=2.
    N, C, T, S = 2, 16, 16, 2
    assert C % S == 0
    Cs = C // S

    key = jax.random.PRNGKey(0)
    kx, kw1, kb1, kw2, kb2 = jax.random.split(key, 5)
    x = jax.random.normal(kx, (N, C, T), dtype=jnp.float32)
    w1 = 0.1 * jax.random.normal(kw1, (Cs, C), dtype=jnp.float32)  # linear1 W
    b1 = 0.1 * jax.random.normal(kb1, (Cs,), dtype=jnp.float32)    # linear1 b
    w2 = 0.1 * jax.random.normal(kw2, (C, Cs), dtype=jnp.float32)  # linear2 W
    b2 = 0.1 * jax.random.normal(kb2, (C,), dtype=jnp.float32)     # linear2 b

    out = se_connect(x, w1, b1, w2, b2)
    out = jax.block_until_ready(out)

    ref = _reference(x, w1, b1, w2, b2)
    assert out.shape == (N, C, T)
    assert jnp.allclose(out, ref, rtol=1e-4, atol=1e-4), "mismatch vs reference"
    print("KERNEL_OK")
</pallas_src>

<mosaic_0001>
module attributes {stable_mosaic.version = 11 : i64} {
  func.func @_squeeze_kernel(%arg0: i32, %arg1: i32, %arg2: memref<1x16x16xf32, #tpu.memory_space<vmem>>, %arg3: memref<1x16x1xf32, #tpu.memory_space<vmem>>) attributes {dimension_semantics = [#tpu.dimension_semantics<parallel>, #tpu.dimension_semantics<arbitrary>], iteration_bounds = array<i64: 2, 1>, scalar_prefetch = 0 : i64, scratch_operands = 0 : i64, tpu.core_type = #tpu.core_type<tc>, window_params = [{transform_indices = @transform_0, window_bounds = array<i64: 1, 16, 16>}, {transform_indices = @transform_1, window_bounds = array<i64: 1, 16, 1>}]} {
    %c0_i32 = arith.constant 0 : i32
    %0 = arith.cmpi eq, %arg1, %c0_i32 : i32
    %1 = arith.extui %0 : i1 to i32
    %c0_i32_0 = arith.constant 0 : i32
    %2 = arith.cmpi ne, %1, %c0_i32_0 : i32
    scf.if %2 {
      %cst_11 = arith.constant 0.000000e+00 : f32
      %16 = vector.broadcast %cst_11 : f32 to vector<16x1xf32>
      %c0_12 = arith.constant 0 : index
      %c0_13 = arith.constant 0 : index
      %c0_14 = arith.constant 0 : index
      %17 = vector.load %arg3[%c0_12, %c0_13, %c0_14] : memref<1x16x1xf32, #tpu.memory_space<vmem>>, vector<1x16x1xf32>
      %18 = vector.shape_cast %17 : vector<1x16x1xf32> to vector<16x1xf32>
      %19 = vector.shape_cast %16 : vector<16x1xf32> to vector<1x16x1xf32>
      tpu.vector_store %arg3[%c0_12, %c0_13, %c0_14], %19 {strides = array<i32>} : memref<1x16x1xf32, #tpu.memory_space<vmem>>, vector<1x16x1xf32>,
    } else {
    }
    %c0 = arith.constant 0 : index
    %c0_1 = arith.constant 0 : index
    %c0_2 = arith.constant 0 : index
    %3 = vector.load %arg2[%c0, %c0_1, %c0_2] : memref<1x16x16xf32, #tpu.memory_space<vmem>>, vector<1x16x16xf32>
    %4 = vector.shape_cast %3 : vector<1x16x16xf32> to vector<16x16xf32>
    %c0_3 = arith.constant 0 : index
    %c0_4 = arith.constant 0 : index
    %c0_5 = arith.constant 0 : index
    %5 = vector.load %arg3[%c0_3, %c0_4, %c0_5] : memref<1x16x1xf32, #tpu.memory_space<vmem>>, vector<1x16x1xf32>
    %6 = vector.shape_cast %5 : vector<1x16x1xf32> to vector<16x1xf32>
    %cst = arith.constant dense<0.000000e+00> : vector<16xf32>
    %7 = vector.multi_reduction <add>, %4, %cst [1] : vector<16x16xf32> to vector<16xf32>
    %8 = vector.shape_cast %7 : vector<16xf32> to vector<16x1xf32>
    %9 = arith.addf %6, %8 : vector<16x1xf32>
    %c0_6 = arith.constant 0 : index
    %c0_7 = arith.constant 0 : index
    %c0_8 = arith.constant 0 : index
    %10 = vector.load %arg3[%c0_6, %c0_7, %c0_8] : memref<1x16x1xf32, #tpu.memory_space<vmem>>, vector<1x16x1xf32>
    %11 = vector.shape_cast %10 : vector<1x16x1xf32> to vector<16x1xf32>
    %12 = vector.shape_cast %9 : vector<16x1xf32> to vector<1x16x1xf32>
    tpu.vector_store %arg3[%c0_6, %c0_7, %c0_8], %12 {strides = array<i32>} : memref<1x16x1xf32, #tpu.memory_space<vmem>>, vector<1x16x1xf32>,
    %c0_i32_9 = arith.constant 0 : i32
    %13 = arith.cmpi eq, %arg1, %c0_i32_9 : i32
    %14 = arith.extui %13 : i1 to i32
    %c0_i32_10 = arith.constant 0 : i32
    %15 = arith.cmpi ne, %14, %c0_i32_10 : i32
    scf.if %15 {
      %c0_11 = arith.constant 0 : index
      %c0_12 = arith.constant 0 : index
      %c0_13 = arith.constant 0 : index
      %16 = vector.load %arg3[%c0_11, %c0_12, %c0_13] : memref<1x16x1xf32, #tpu.memory_space<vmem>>, vector<1x16x1xf32>
      %17 = vector.shape_cast %16 : vector<1x16x1xf32> to vector<16x1xf32>
      %cst_14 = arith.constant 6.250000e-02 : f32
      %18 = vector.broadcast %cst_14 : f32 to vector<16x1xf32>
      %19 = arith.mulf %17, %18 : vector<16x1xf32>
      %c0_15 = arith.constant 0 : index
      %c0_16 = arith.constant 0 : index
      %c0_17 = arith.constant 0 : index
      %20 = vector.load %arg3[%c0_15, %c0_16, %c0_17] : memref<1x16x1xf32, #tpu.memory_space<vmem>>, vector<1x16x1xf32>
      %21 = vector.shape_cast %20 : vector<1x16x1xf32> to vector<16x1xf32>
      %22 = vector.shape_cast %19 : vector<16x1xf32> to vector<1x16x1xf32>
      tpu.vector_store %arg3[%c0_15, %c0_16, %c0_17], %22 {strides = array<i32>} : memref<1x16x1xf32, #tpu.memory_space<vmem>>, vector<1x16x1xf32>,
    } else {
    }
    return
  }
  func.func @transform_0(%arg0: i32, %arg1: i32) -> (i32, i32, i32) {
    %c0_i32 = arith.constant 0 : i32
    %c0_i32_0 = arith.constant 0 : i32
    return %arg0, %c0_i32, %arg1 : i32, i32, i32
  }
  func.func @transform_1(%arg0: i32, %arg1: i32) -> (i32, i32, i32) {
    %c0_i32 = arith.constant 0 : i32
    %c0_i32_0 = arith.constant 0 : i32
    %c0_i32_1 = arith.constant 0 : i32
    return %arg0, %c0_i32, %c0_i32_0 : i32, i32, i32
  }
}

</mosaic_0001>

<bundles_post_ra>
// kernel: tpu_custom_call.1
= control target key start
LH: loop header
LB: loop body
LE: loop exit
PB: predicated region body
PF: predicated region fallthrough
CT: control target
= control target key end

     0   :  { %6 = vsyncpa [#allocation3], 0  ;;  %s530_s0 = inlined_call_operand.hbm [shape: f32[2,16,16], index: 0, kind: input, shape index: {}]   ;;  %s531_s1 = inlined_call_operand.vmem [shape: f32[2,16,1], index: 1, kind: output, shape index: {}]  }
   0x1   :  { %8 = vsyncpa [#allocation3 + $0x1], 0  ;;  %s428_s6 = smov 0   ;;  %s430_s7 = smov 0  }
   0x2   :  { %s432_s8 = smov 0   ;;  %s434_s9 = smov 0  }
   0x3   :  { %s436_s10 = smov 0   ;;  %s438_s11 = smov 0  }
   0x4 LB: > { %s261_s12 = sadd.s32 4294967295, %s412_s11   ;;  %s26_s13 = sadd.s32 1, %s408_s10  ;;  %s412_s11 = sphi %s438_s11, %s14_s11   ;;  %s408_s10 = sphi %s436_s10, %s539_s10   ;;  %s404_s9 = sphi %s434_s9, %s538_s9   ;;  %s400_s8 = sphi %s432_s8, %s537_s8   ;;  %s396_s7 = sphi %s430_s7, %s536_s7   ;;  %s392_s6 = sphi %s428_s6, %s535_s6  }
   0x5   : > { %p28_p0 = scmp.ge.s32.totalorder %s26_s13, 2  ;;  %s35_s14 = sadd.s32 1, %s400_s8 }
   0x6   : > { %p42_p1 = scmp.ne.s32.totalorder %s400_s8, %s396_s7  ;;  %p43_p2 = scmp.eq.s32.totalorder %s412_s11, 0 }
   0x7   : > { %s541_s13 = smov (%p28_p0, %s26_s13), 0  ;;  %p48_p4 = scmp.ne.s32.totalorder %s396_s7, %s392_s6 }
   0x8   : > { %p464_p3 = por %p43_p2, %p42_p1  ;;  %s30_s16 = ssub.s32 %s408_s10, %s541_s13 }
   0x9   : > { %p49_p5 = scmp.eq.s32.totalorder %s261_s12, 0  ;;  %p33_p6 = scmp.eq.s32.totalorder %s30_s16, 0 }
   0xa   : > { %p282_p8 = scmp.lt.s32.totalorder %s412_s11, 2  ;;  %s98_s19 = sand.u32 1, %s400_s8  }
   0xb   : > { %p471_p7 = por %p49_p5, %p48_p4  ;;  %s274_s20 = sshll.u32 %s408_s10, 8 }
   0xc   : > { %s477_s18 = scalar_select %p33_p6, %s400_s8, %s35_s14  }
   0xd   : > { %s265_s21 = sshll.u32 %s98_s19, 4  ;;  %s109_s24 = scalar_lea.hbm %s530_s0, %s274_s20 }
   0xe   : > { %s102_s25 = scalar_lea.vmem [#allocation2], %s265_s21  ;;  %p486_p9 = pnand %p282_p8, %p464_p3 }
   0xf   : > { %s110_s26 = sshll.u32 %s102_s25, 4  ;;  %s99_s28 = scalar_lea.sflag [#allocation3], %s98_s19  ;;  %s111_s26 = int_to_ptr.vmem [resolvable:$true] %s110_s26 }
  0x10   : > { %p336_p10 = pneg %p486_p9  ;;  %s347_s29 = scalar_lea.vmem %s111_s26, 256 }
  0x11   : > { %p348_p11 = scmp.ne.s32.totalorder %s111_s26, %s347_s29  ;;  %s414_s30 = smov [#allocation2]  }
  0x12   : > { %s352_s2 = sshll.u32 %s414_s30, 4  ;;  %s353_s2 = int_to_ptr.vmem [resolvable:$false] %s352_s2 }
  0x13   : > { %p350_p12 = pnand %p348_p11, %p336_p10  ;;  %s354_s3 = scalar_lea.vmem %s353_s2, 512 }
  0x14   : > { %p355_p0 = scmp.lt.s32.totalorder %s111_s26, %s353_s2  ;;  %p356_p1 = scmp.lt.s32.totalorder %s354_s3, %s347_s29 }
  0x15   : > { %p351_p13 = pneg %p350_p12 }
  0x16   : > { %p357_p2 = por %p356_p1, %p355_p0 }
  0x18   : > { %p358_p3 = pnand %p357_p2, %p351_p13 }
  0x1a   : > { %361 = shalt.err (!%p358_p3)
}
  0x1b   : > { %s415_s4 = smov 128   ;;  %s416_s5 = smov 8  }
  0x1c   : > { %281 = dma.hbm_to_vmem [thread:$0]  (!%p486_p9), %s109_s24, 256, %s111_s26, %s99_s28, %s415_s4, %s415_s4, %s416_s5  }
  0x1d   : > { %p268_p4 = scmp.ge.s32.totalorder %s412_s11, 1  ;;  %p118_p5 = scmp.lt.s32.totalorder %s412_s11, 3 }
  0x1f   : > { %p119_p6 = pnand %p268_p4, %p118_p5 }
  0x20   : > { %s124_s6 = sand.u32 (!%p119_p6), 1, %s396_s7  }
  0x21   : > { %122 = sbr.rel (%p119_p6) target bundleno = 196 (0xc4), region = 24  ;;  %s269_s12 = sshll.u32 (!%p119_p6), %s124_s6, 4 }
  0x22   : > { %s125_s14 = scalar_lea.sflag (!%p119_p6), [#allocation3], %s124_s6  ;;  %s128_s15 = scalar_lea.vmem (!%p119_p6), [#allocation2], %s269_s12 }
  0x26   : > { %387 = dma.done.wait (%p471_p7), %s125_s14, 256  }
  0x27   : > { %389 = vsyncadd (%p471_p7), %s125_s14, 4294967040  ;;  %p147_p8 = scmp.lt.s32.totalorder %s404_s9, 1  ;;  %vm156_vm0 = vcmask 7168   ;;  %vm163_vm1 = vcmask 130048   ;;  %v417_v0 = vmov 0.0   ;;  %v159_v1 = vld [vmem:[%s128_s15] sm:$0xff] }
  0x28   : > { %v160_v2 = vld [vmem:[%s128_s15 + $0x8] sm:$0xff]  ;;  %v164_v3 = vsel %vm163_vm1, %v159_v1, 0.0 }
  0x29   : > { %s543_s9 = smov (!%p147_p8, %s404_s9), 1  ;;  %165 = vadd.xlane.f32.xlu0 %v164_v3  ;;  %v167_v4 = vsel %vm163_vm1, %v160_v2, 0.0 }
  0x2a   : > { %s275_s16 = sshll.u32 %s543_s9, 4 }
  0x2b   : > { %s151_s21 = scalar_lea.vmem %s531_s1, %s275_s16 }
  0x2c   : > { %157 = vst.msk [vmem:[%s151_s21] sm:$0xff] %vm156_vm0, %v417_v0  ;;  %158 = vst.msk [vmem:[%s151_s21 + $0x8] sm:$0xff] %vm156_vm0, %v417_v0 }
  0x2d   : > { %168 = vadd.xlane.f32.xlu0 %v167_v4 }
  0x33   : > { %v161_v5 = vld [vmem:[%s151_s21] sm:$0xff]  ;;  %v162_v8 = vld [vmem:[%s151_s21 + $0x8] sm:$0xff] }
  0xb2   : > { %v166_v6 = vpop.xlane.xlu0 %165 }
  0xb3   : > { %v170_v7 = vadd.f32 %v166_v6, %v161_v5 }
  0xb5   : > { %173 = vst.msk [vmem:[%s151_s21] sm:$0xff] %vm156_vm0, %v170_v7 }
  0xb6   : > { %v169_v9 = vpop.xlane.xlu0 %168 }
  0xb7   : > { %v171_v10 = vadd.f32 %v169_v9, %v162_v8 }
  0xb9   : > { %174 = vst.msk [vmem:[%s151_s21 + $0x8] sm:$0xff] %vm156_vm0, %v171_v10 }
  0xbc   : > { %v178_v11 = vld [vmem:[%s151_s21] sm:$0xff] }
  0xbd   : > { %v180_v12 = vmul.f32 0.0625, %v178_v11 }
  0xbf   : > { %182 = vst.msk [vmem:[%s151_s21] sm:$0xff] %vm156_vm0, %v180_v12 }
  0xc0   : > { %v179_v13 = vld [vmem:[%s151_s21 + $0x8] sm:$0xff] }
  0xc1   : > { %v181_v14 = vmul.f32 0.0625, %v179_v13 }
  0xc3   : > { %183 = vst.msk [vmem:[%s151_s21 + $0x8] sm:$0xff] %vm156_vm0, %v181_v14 }
  0xc4 PF: > { %s14_s11 = sadd.s32 1, %s412_s11   ;;  %s535_s6 = smov %s396_s7 }
  0xc5   : > { %p11_p7 = scmp.ge.s32.totalorder %s14_s11, 4   ;;  %s536_s7 = smov %s400_s8 }
  0xc6   : > { %s537_s8 = smov %s477_s18  ;;  %s538_s9 = smov %s408_s10 }
  0xc7   : > { %s539_s10 = smov %s541_s13  ;;  %13 = sbr.rel (!%p11_p7) target bundleno = 4 (0x4), region = 72 }
  0xcc   :  { %205 = vsyncpa [#allocation3], 1 }
  0xcd   :  { %207 = vsyncpa [#allocation3 + $0x1], 1 }

</bundles_post_ra>
